<compile_context>
chip_gen: v6e
topology: v6e:2x2x1
jax: 0.10.0
libtpu: 0.0.40
codegen_flags: <defaults>
</compile_context>

<pallas_src>
import functools

import jax
import jax.numpy as jnp
import numpy as np
from jax.experimental import pallas as pl
from jax.experimental.pallas import tpu as pltpu


def _round_up(x: int, m: int) -> int:
    return (x + m - 1) // m * m


# --------------------------------------------------------------------------- #
# Kernel: single-pass streamed accumulation over packed-row tiles of
#   gram = X_packed^T @ X_packed        [F_pack, F_pack]  (MXU, f32 acc)
#   sig  = sum_rows sigmoid(X_packed)   [1, F_pack]
#   use  = sum_rows (|X_packed| > .01)  [1, F_pack]
# Grid = (core split "parallel", reduction steps "arbitrary"); the outputs are
# revisited across the reduction axis, i.e. they ARE the VMEM accumulators.
# --------------------------------------------------------------------------- #
def _diversity_accum_kernel(x_ref, gram_ref, sig_ref, use_ref, *,
                            steps_per_core, tile_rows, n_pack_rows,
                            first_masked_step, need_mask,
                            include_corr, include_entropy):
    c = pl.program_id(0)                      # core-split index ("parallel")
    i = pl.program_id(1)                      # reduction step   ("arbitrary")
    g = c * steps_per_core + i                # global packed-row tile index

    @pl.when(i == 0)
    def _init():
        gram_ref[...] = jnp.zeros_like(gram_ref)
        sig_ref[...] = jnp.zeros_like(sig_ref)
        use_ref[...] = jnp.zeros_like(use_ref)

    def _accum(masked):
        x = x_ref[...]                        # native dtype [tile_rows, F_pack]
        if masked:
            rows = g * tile_rows + jax.lax.broadcasted_iota(
                jnp.int32, (tile_rows, 1), 0)
            valid = rows < n_pack_rows        # [tile_rows, 1]
            x = jnp.where(valid, x, jnp.zeros_like(x))
        xf = x.astype(jnp.float32)            # elementwise path in f32 (v5e-safe)
        if include_corr:
            # Native-dtype operands straight into the MXU, f32 accumulation.
            gram_ref[...] += jax.lax.dot_general(
                x, x, dimension_numbers=(((0,), (0,)), ((), ())),
                preferred_element_type=jnp.float32)
        if include_entropy:
            probs = jax.nn.sigmoid(xf)
            if masked:
                probs = jnp.where(valid, probs, 0.0)   # sigmoid(0)=0.5 must not count
            sig_ref[...] += jnp.sum(probs, axis=0, keepdims=True)
        use_ref[...] += jnp.sum((jnp.abs(xf) > 0.01).astype(jnp.float32),
                                axis=0, keepdims=True)

    if need_mask:
        # Hot steps stay mask-free; only ragged / overflow steps pay the
        # iota + compare + select correction.
        @pl.when(g < first_masked_step)
        def _hot():
            _accum(False)

        @pl.when(g >= first_masked_step)
        def _tail():
            _accum(True)
    else:
        _accum(False)


def _default_tile_rows(f_pack: int, itemsize: int) -> int:
    """Packed-row tile height budgeted against on-chip VMEM (double-buffered)."""
    phys_vmem = 64 << 20                      # conservative default: v7x per-TC VMEM
    try:
        phys_vmem = int(pltpu.get_tpu_info().vmem_capacity_bytes)
    except Exception:
        pass                                  # keep the safe default
    in_budget = max(phys_vmem // 2 - (8 << 20), 4 << 20)   # both pipeline buffers
    rows = (in_budget // 2) // (f_pack * itemsize)         # one input buffer
    return int(max(8, min(rows, 1 << 16)))


def diversity_loss(feature_activations,
                   diversity_weight: float = 0.1,
                   correlation_penalty: float = 0.01,
                   entropy_weight: float = 0.1,
                   tile_rows: int | None = None,
                   num_core_splits: int = 2):
    """feature_activations: [batch, seq, n_features] -> scalar f32 loss."""
    b, s, f = feature_activations.shape
    n = b * s
    include_corr = f > 1
    include_entropy = n > 1

    # TODO(synk): the PyTorch path randomly subsamples 1000 features via
    # torch.randperm when n_features > 1000; not implemented (all features used).

    flat = feature_activations.reshape(n, f)  # keep native dtype (bf16 stays bf16)

    # Lane packing: view [N, F] as [N/P, P*F] with P*F == 128 when F divides 128,
    # so the gram/elementwise work uses all 128 lanes (F=32 alone uses 32/128).
    p_pack = 128 // f if (f <= 128 and 128 % f == 0) else 1
    pad_rows = (-n) % p_pack
    if pad_rows:
        # Zero rows are exact for gram/usage; their sigmoid(0)=0.5 contribution
        # is subtracted analytically at finalize.
        flat = jnp.pad(flat, ((0, pad_rows), (0, 0)))
    f_pack = p_pack * f
    n_pack = (n + pad_rows) // p_pack
    x_packed = flat.reshape(n_pack, f_pack)   # pure metadata reshape (row-major)

    itemsize = jnp.dtype(x_packed.dtype).itemsize
    if tile_rows is None:
        tile_rows = _default_tile_rows(f_pack, itemsize)
    tile_rows = int(min(tile_rows, _round_up(n_pack, 8)))
    tile_rows = max(8, _round_up(tile_rows, 8))

    steps_total = pl.cdiv(n_pack, tile_rows)
    num_parallel = num_core_splits if (num_core_splits > 1
                                       and steps_total >= num_core_splits) else 1
    steps_per_core = pl.cdiv(steps_total, num_parallel)

    # Steps >= first_masked_step touch rows past n_pack and must be row-masked.
    first_masked_step = n_pack // tile_rows
    need_mask = (num_parallel * steps_per_core) > first_masked_step

    if num_parallel * steps_per_core == steps_total:
        x_index_map = lambda c, i: (c * steps_per_core + i, 0)
    else:
        # Overflow steps (last core only) re-read an in-bounds block; their rows
        # are fully masked in-kernel so the duplicate read contributes nothing.
        x_index_map = lambda c, i: (
            jnp.minimum(c * steps_per_core + i, steps_total - 1), 0)

    kernel = functools.partial(
        _diversity_accum_kernel,
        steps_per_core=steps_per_core, tile_rows=tile_rows, n_pack_rows=n_pack,
        first_masked_step=first_masked_step, need_mask=need_mask,
        include_corr=include_corr, include_entropy=include_entropy)

    out_bytes = 4 * (f_pack * f_pack + 2 * f_pack)
    vmem_limit = int(2 * tile_rows * f_pack * itemsize + 2 * out_bytes + (8 << 20))
    vmem_limit = min(max(vmem_limit, 16 << 20), 112 << 20)

    gram_p, sig_p, use_p = pl.pallas_call(
        kernel,
        out_shape=(
            jax.ShapeDtypeStruct((num_parallel, f_pack, f_pack), jnp.float32),
            jax.ShapeDtypeStruct((num_parallel, 1, f_pack), jnp.float32),
            jax.ShapeDtypeStruct((num_parallel, 1, f_pack), jnp.float32),
        ),
        grid_spec=pltpu.PrefetchScalarGridSpec(
            num_scalar_prefetch=0,
            grid=(num_parallel, steps_per_core),
            in_specs=[
                # NOTE: add pipeline_mode=pl.Buffered(3) only if a trace still
                # shows exposed DMA with these MiB-scale tiles.
                pl.BlockSpec((tile_rows, f_pack), x_index_map),
            ],
            out_specs=(
                pl.BlockSpec((None, f_pack, f_pack), lambda c, i: (c, 0, 0)),
                pl.BlockSpec((None, 1, f_pack), lambda c, i: (c, 0, 0)),
                pl.BlockSpec((None, 1, f_pack), lambda c, i: (c, 0, 0)),
            ),
        ),
        compiler_params=pltpu.CompilerParams(
            dimension_semantics=("parallel", "arbitrary"),
            vmem_limit_bytes=vmem_limit),
        cost_estimate=pl.CostEstimate(
            flops=(2 * n_pack * f_pack * f_pack if include_corr else 0)
            + 8 * n_pack * f_pack,
            transcendentals=n_pack * f_pack,
            bytes_accessed=n_pack * f_pack * itemsize + 3 * out_bytes),
    )(x_packed)

    # ------------- O(F^2) finalize in plain JAX (outside the kernel) --------- #
    n_f = jnp.float32(n)
    gram_packed = jnp.sum(gram_p, axis=0)                  # combine core partials
    sig = jnp.sum(sig_p, axis=(0, 1))                      # [F_pack]
    use = jnp.sum(use_p, axis=(0, 1))                      # [F_pack]
    if p_pack > 1:
        sig = jnp.sum(sig.reshape(p_pack, f), axis=0)      # fold lane groups -> [F]
        use = jnp.sum(use.reshape(p_pack, f), axis=0)

    corr_loss = jnp.float32(0.0)
    if include_corr:
        if p_pack > 1:
            # X^T X = sum of the P diagonal FxF blocks of the packed gram.
            blocks = gram_packed.reshape(p_pack, f, p_pack, f)
            gram = jnp.sum(jnp.diagonal(blocks, axis1=0, axis2=2), axis=-1)  # [F, F]
        else:
            gram = gram_packed
        # F.normalize(dim=0) clamps the column norm at 1e-12.
        inv = 1.0 / jnp.maximum(jnp.sqrt(jnp.diagonal(gram)), 1e-12)
        corr = jnp.abs(gram) * inv[:, None] * inv[None, :] / n_f
        off = corr * (1.0 - jnp.eye(f, dtype=corr.dtype))
        corr_loss = jnp.sum(off) / jnp.float32(f * f)

    entropy_loss = jnp.float32(0.0)
    if include_entropy:
        p = (sig - 0.5 * pad_rows) / n_f   # remove sigmoid(0)=0.5 of padded rows
        eps = jnp.float32(1e-8)
        ent = -(p * jnp.log(p + eps) + (1.0 - p) * jnp.log(1.0 - p + eps))
        entropy_loss = -jnp.mean(ent)

    usage = use / n_f
    util_loss = jnp.mean(jnp.maximum(jnp.float32(0.001) - usage, 0.0))

    total = (correlation_penalty * corr_loss
             + entropy_weight * entropy_loss
             + 0.01 * util_loss)
    return (jnp.float32(diversity_weight) * total).astype(jnp.float32)


# --------------------------- pure-JAX reference ----------------------------- #
def _diversity_loss_ref(x, diversity_weight=0.1, correlation_penalty=0.01,
                        entropy_weight=0.1):
    """Mirrors the PyTorch forward exactly (in f32)."""
    b, s, f = x.shape
    flat = x.reshape(-1, f).astype(jnp.float32)
    n = flat.shape[0]
    corr_loss = 0.0
    if f > 1:
        norm = jnp.maximum(jnp.linalg.norm(flat, axis=0, keepdims=True), 1e-12)
        nf = flat / norm
        cm = (nf.T @ nf) / n
        off = cm * (1.0 - jnp.eye(f))
        corr_loss = jnp.mean(jnp.abs(off))
    ent_loss = 0.0
    if n > 1:
        p = jnp.mean(jax.nn.sigmoid(flat), axis=0)
        eps = 1e-8
        ent = -(p * jnp.log(p + eps) + (1.0 - p) * jnp.log(1.0 - p + eps))
        ent_loss = -jnp.mean(ent)
    usage = jnp.mean((jnp.abs(flat) > 0.01).astype(jnp.float32), axis=0)
    util = jnp.mean(jnp.maximum(0.001 - usage, 0.0))
    total = correlation_penalty * corr_loss + entropy_weight * ent_loss + 0.01 * util
    return jnp.float32(diversity_weight * total)


if __name__ == "__main__":
    key = jax.random.PRNGKey(0)
    k1, k2, k3, k4 = jax.random.split(key, 4)

    # 1) Nominal small shape (batch=2, seq=8, n_features=32), f32, lane-packed x4.
    x1 = jax.random.normal(k1, (2, 8, 32), dtype=jnp.float32)
    got = jax.block_until_ready(diversity_loss(x1))
    ref = jax.block_until_ready(_diversity_loss_ref(x1))
    np.testing.assert_allclose(np.asarray(got), np.asarray(ref), rtol=1e-5, atol=1e-6)

    # 2) Many grid steps + ragged tail + 2-way core split (forced tiny tile).
    x2 = 0.5 * jax.random.normal(k2, (4, 100, 32), dtype=jnp.float32)
    got = jax.block_until_ready(diversity_loss(x2, tile_rows=8))
    ref = jax.block_until_ready(_diversity_loss_ref(x2))
    np.testing.assert_allclose(np.asarray(got), np.asarray(ref), rtol=1e-5, atol=1e-6)

    # 3) bf16 input straight into the MXU; F=48 does not divide 128 -> unpacked path.
    x3 = (0.3 * jax.random.normal(k3, (2, 24, 48), dtype=jnp.float32)).astype(jnp.bfloat16)
    got = jax.block_until_ready(diversity_loss(x3, tile_rows=8))
    ref = jax.block_until_ready(_diversity_loss_ref(x3))
    np.testing.assert_allclose(np.asarray(got), np.asarray(ref), rtol=1e-4, atol=1e-5)

    # 4) N not a multiple of the packing factor -> zero-pad + sigmoid correction.
    x4 = jax.random.normal(k4, (3, 5, 32), dtype=jnp.float32)
    got = jax.block_until_ready(diversity_loss(x4))
    ref = jax.block_until_ready(_diversity_loss_ref(x4))
    np.testing.assert_allclose(np.asarray(got), np.asarray(ref), rtol=1e-5, atol=1e-6)

    print("KERNEL_OK")
</pallas_src>

<mosaic_0001>
module attributes {stable_mosaic.version = 11 : i64} {
  func.func @_diversity_accum_kernel(%arg0: i32, %arg1: i32, %arg2: memref<8x128xf32, #tpu.memory_space<vmem>>, %arg3: memref<1x128x128xf32, #tpu.memory_space<vmem>>, %arg4: memref<1x1x128xf32, #tpu.memory_space<vmem>>, %arg5: memref<1x1x128xf32, #tpu.memory_space<vmem>>) attributes {dimension_semantics = [#tpu.dimension_semantics<parallel>, #tpu.dimension_semantics<arbitrary>], iteration_bounds = array<i64: 1, 1>, scalar_prefetch = 0 : i64, scratch_operands = 0 : i64, tpu.core_type = #tpu.core_type<tc>, window_params = [{transform_indices = @transform_0, window_bounds = array<i64: 8, 128>}, {transform_indices = @transform_1, window_bounds = array<i64: 1, 128, 128>}, {transform_indices = @transform_2, window_bounds = array<i64: 1, 1, 128>}, {transform_indices = @transform_3, window_bounds = array<i64: 1, 1, 128>}]} {
    %c1_i32 = arith.constant 1 : i32
    %0 = arith.muli %arg0, %c1_i32 : i32
    %1 = arith.addi %0, %arg1 : i32
    %c0_i32 = arith.constant 0 : i32
    %2 = arith.cmpi eq, %arg1, %c0_i32 : i32
    %3 = arith.extui %2 : i1 to i32
    %c0_i32_0 = arith.constant 0 : i32
    %4 = arith.cmpi ne, %3, %c0_i32_0 : i32
    scf.if %4 {
      %cst = arith.constant 0.000000e+00 : f32
      %11 = vector.broadcast %cst : f32 to vector<128x128xf32>
      %c0 = arith.constant 0 : index
      %c0_5 = arith.constant 0 : index
      %c0_6 = arith.constant 0 : index
      %12 = vector.load %arg3[%c0, %c0_5, %c0_6] : memref<1x128x128xf32, #tpu.memory_space<vmem>>, vector<1x128x128xf32>
      %13 = vector.shape_cast %12 : vector<1x128x128xf32> to vector<128x128xf32>
      %14 = vector.shape_cast %11 : vector<128x128xf32> to vector<1x128x128xf32>
      tpu.vector_store %arg3[%c0, %c0_5, %c0_6], %14 {strides = array<i32>} : memref<1x128x128xf32, #tpu.memory_space<vmem>>, vector<1x128x128xf32>,
      %cst_7 = arith.constant 0.000000e+00 : f32
      %15 = vector.broadcast %cst_7 : f32 to vector<1x128xf32>
      %c0_8 = arith.constant 0 : index
      %c0_9 = arith.constant 0 : index
      %c0_10 = arith.constant 0 : index
      %16 = vector.load %arg4[%c0_8, %c0_9, %c0_10] : memref<1x1x128xf32, #tpu.memory_space<vmem>>, vector<1x1x128xf32>
      %17 = vector.shape_cast %16 : vector<1x1x128xf32> to vector<1x128xf32>
      %18 = vector.shape_cast %15 : vector<1x128xf32> to vector<1x1x128xf32>
      tpu.vector_store %arg4[%c0_8, %c0_9, %c0_10], %18 {strides = array<i32>} : memref<1x1x128xf32, #tpu.memory_space<vmem>>, vector<1x1x128xf32>,
      %cst_11 = arith.constant 0.000000e+00 : f32
      %19 = vector.broadcast %cst_11 : f32 to vector<1x128xf32>
      %c0_12 = arith.constant 0 : index
      %c0_13 = arith.constant 0 : index
      %c0_14 = arith.constant 0 : index
      %20 = vector.load %arg5[%c0_12, %c0_13, %c0_14] : memref<1x1x128xf32, #tpu.memory_space<vmem>>, vector<1x1x128xf32>
      %21 = vector.shape_cast %20 : vector<1x1x128xf32> to vector<1x128xf32>
      %22 = vector.shape_cast %19 : vector<1x128xf32> to vector<1x1x128xf32>
      tpu.vector_store %arg5[%c0_12, %c0_13, %c0_14], %22 {strides = array<i32>} : memref<1x1x128xf32, #tpu.memory_space<vmem>>, vector<1x1x128xf32>,
    } else {
    }
    %c0_i32_1 = arith.constant 0 : i32
    %5 = arith.cmpi slt, %1, %c0_i32_1 : i32
    %6 = arith.extui %5 : i1 to i32
    %c0_i32_2 = arith.constant 0 : i32
    %7 = arith.cmpi ne, %6, %c0_i32_2 : i32
    scf.if %7 {
      %c0 = arith.constant 0 : index
      %c0_5 = arith.constant 0 : index
      %11 = vector.load %arg2[%c0, %c0_5] : memref<8x128xf32, #tpu.memory_space<vmem>>, vector<8x128xf32>
      %c0_6 = arith.constant 0 : index
      %c0_7 = arith.constant 0 : index
      %c0_8 = arith.constant 0 : index
      %12 = vector.load %arg3[%c0_6, %c0_7, %c0_8] : memref<1x128x128xf32, #tpu.memory_space<vmem>>, vector<1x128x128xf32>
      %13 = vector.shape_cast %12 : vector<1x128x128xf32> to vector<128x128xf32>
      %cst = arith.constant dense<0.000000e+00> : vector<128x128xf32>
      %14 = tpu.matmul %11, %11, %cst {dimension_numbers = #tpu.dot_dimension_numbers<[0], [0], [1], [1], [0, 1, 1, 1], [], []>} : vector<8x128xf32>, vector<8x128xf32>, vector<128x128xf32> -> vector<128x128xf32>
      %15 = arith.addf %13, %14 : vector<128x128xf32>
      %c0_9 = arith.constant 0 : index
      %c0_10 = arith.constant 0 : index
      %c0_11 = arith.constant 0 : index
      %16 = vector.load %arg3[%c0_9, %c0_10, %c0_11] : memref<1x128x128xf32, #tpu.memory_space<vmem>>, vector<1x128x128xf32>
      %17 = vector.shape_cast %16 : vector<1x128x128xf32> to vector<128x128xf32>
      %18 = vector.shape_cast %15 : vector<128x128xf32> to vector<1x128x128xf32>
      tpu.vector_store %arg3[%c0_9, %c0_10, %c0_11], %18 {strides = array<i32>} : memref<1x128x128xf32, #tpu.memory_space<vmem>>, vector<1x128x128xf32>,
      %19 = arith.negf %11 : vector<8x128xf32>
      %20 = math.exp %19 : vector<8x128xf32>
      %cst_12 = arith.constant 1.000000e+00 : f32
      %21 = vector.broadcast %cst_12 : f32 to vector<8x128xf32>
      %22 = arith.addf %21, %20 : vector<8x128xf32>
      %23 = arith.divf %21, %22 : vector<8x128xf32>
      %c0_13 = arith.constant 0 : index
      %c0_14 = arith.constant 0 : index
      %c0_15 = arith.constant 0 : index
      %24 = vector.load %arg4[%c0_13, %c0_14, %c0_15] : memref<1x1x128xf32, #tpu.memory_space<vmem>>, vector<1x1x128xf32>
      %25 = vector.shape_cast %24 : vector<1x1x128xf32> to vector<1x128xf32>
      %cst_16 = arith.constant dense<0.000000e+00> : vector<128xf32>
      %26 = vector.multi_reduction <add>, %23, %cst_16 [0] : vector<8x128xf32> to vector<128xf32>
      %27 = vector.shape_cast %26 : vector<128xf32> to vector<1x128xf32>
      %28 = arith.addf %25, %27 : vector<1x128xf32>
      %c0_17 = arith.constant 0 : index
      %c0_18 = arith.constant 0 : index
      %c0_19 = arith.constant 0 : index
      %29 = vector.load %arg4[%c0_17, %c0_18, %c0_19] : memref<1x1x128xf32, #tpu.memory_space<vmem>>, vector<1x1x128xf32>
      %30 = vector.shape_cast %29 : vector<1x1x128xf32> to vector<1x128xf32>
      %31 = vector.shape_cast %28 : vector<1x128xf32> to vector<1x1x128xf32>
      tpu.vector_store %arg4[%c0_17, %c0_18, %c0_19], %31 {strides = array<i32>} : memref<1x1x128xf32, #tpu.memory_space<vmem>>, vector<1x1x128xf32>,
      %c0_20 = arith.constant 0 : index
      %c0_21 = arith.constant 0 : index
      %c0_22 = arith.constant 0 : index
      %32 = vector.load %arg5[%c0_20, %c0_21, %c0_22] : memref<1x1x128xf32, #tpu.memory_space<vmem>>, vector<1x1x128xf32>
      %33 = vector.shape_cast %32 : vector<1x1x128xf32> to vector<1x128xf32>
      %34 = math.absf %11 : vector<8x128xf32>
      %cst_23 = arith.constant 0.00999999977 : f32
      %35 = vector.broadcast %cst_23 : f32 to vector<8x128xf32>
      %36 = arith.cmpf ogt, %34, %35 : vector<8x128xf32>
      %37 = arith.extui %36 : vector<8x128xi1> to vector<8x128xi32>
      %38 = arith.sitofp %37 : vector<8x128xi32> to vector<8x128xf32>
      %cst_24 = arith.constant dense<0.000000e+00> : vector<128xf32>
      %39 = vector.multi_reduction <add>, %38, %cst_24 [0] : vector<8x128xf32> to vector<128xf32>
      %40 = vector.shape_cast %39 : vector<128xf32> to vector<1x128xf32>
      %41 = arith.addf %33, %40 : vector<1x128xf32>
      %c0_25 = arith.constant 0 : index
      %c0_26 = arith.constant 0 : index
      %c0_27 = arith.constant 0 : index
      %42 = vector.load %arg5[%c0_25, %c0_26, %c0_27] : memref<1x1x128xf32, #tpu.memory_space<vmem>>, vector<1x1x128xf32>
      %43 = vector.shape_cast %42 : vector<1x1x128xf32> to vector<1x128xf32>
      %44 = vector.shape_cast %41 : vector<1x128xf32> to vector<1x1x128xf32>
      tpu.vector_store %arg5[%c0_25, %c0_26, %c0_27], %44 {strides = array<i32>} : memref<1x1x128xf32, #tpu.memory_space<vmem>>, vector<1x1x128xf32>,
    } else {
    }
    %c0_i32_3 = arith.constant 0 : i32
    %8 = arith.cmpi sge, %1, %c0_i32_3 : i32
    %9 = arith.extui %8 : i1 to i32
    %c0_i32_4 = arith.constant 0 : i32
    %10 = arith.cmpi ne, %9, %c0_i32_4 : i32
    scf.if %10 {
      %c0 = arith.constant 0 : index
      %c0_5 = arith.constant 0 : index
      %11 = vector.load %arg2[%c0, %c0_5] : memref<8x128xf32, #tpu.memory_space<vmem>>, vector<8x128xf32>
      %c8_i32 = arith.constant 8 : i32
      %12 = arith.muli %1, %c8_i32 : i32
      %13 = tpu.iota {dimensions = array<i32: 0>} : vector<8x1xi32>
      %14 = vector.broadcast %12 : i32 to vector<8x1xi32>
      %15 = arith.addi %14, %13 : vector<8x1xi32>
      %c4_i32 = arith.constant 4 : i32
      %16 = vector.broadcast %c4_i32 : i32 to vector<8x1xi32>
      %17 = arith.cmpi slt, %15, %16 : vector<8x1xi32>
      %cst = arith.constant 0.000000e+00 : f32
      %18 = vector.broadcast %cst : f32 to vector<8x128xf32>
      %19 = vector.shape_cast %17 : vector<8x1xi1> to vector<8x1xi1>
      %20 = vector.broadcast %19 : vector<8x1xi1> to vector<8x128xi1>
      %21 = arith.select %20, %11, %18 : vector<8x128xi1>, vector<8x128xf32>
      %c0_6 = arith.constant 0 : index
      %c0_7 = arith.constant 0 : index
      %c0_8 = arith.constant 0 : index
      %22 = vector.load %arg3[%c0_6, %c0_7, %c0_8] : memref<1x128x128xf32, #tpu.memory_space<vmem>>, vector<1x128x128xf32>
      %23 = vector.shape_cast %22 : vector<1x128x128xf32> to vector<128x128xf32>
      %cst_9 = arith.constant dense<0.000000e+00> : vector<128x128xf32>
      %24 = tpu.matmul %21, %21, %cst_9 {dimension_numbers = #tpu.dot_dimension_numbers<[0], [0], [1], [1], [0, 1, 1, 1], [], []>} : vector<8x128xf32>, vector<8x128xf32>, vector<128x128xf32> -> vector<128x128xf32>
      %25 = arith.addf %23, %24 : vector<128x128xf32>
      %c0_10 = arith.constant 0 : index
      %c0_11 = arith.constant 0 : index
      %c0_12 = arith.constant 0 : index
      %26 = vector.load %arg3[%c0_10, %c0_11, %c0_12] : memref<1x128x128xf32, #tpu.memory_space<vmem>>, vector<1x128x128xf32>
      %27 = vector.shape_cast %26 : vector<1x128x128xf32> to vector<128x128xf32>
      %28 = vector.shape_cast %25 : vector<128x128xf32> to vector<1x128x128xf32>
      tpu.vector_store %arg3[%c0_10, %c0_11, %c0_12], %28 {strides = array<i32>} : memref<1x128x128xf32, #tpu.memory_space<vmem>>, vector<1x128x128xf32>,
      %29 = arith.negf %21 : vector<8x128xf32>
      %30 = math.exp %29 : vector<8x128xf32>
      %cst_13 = arith.constant 1.000000e+00 : f32
      %31 = vector.broadcast %cst_13 : f32 to vector<8x128xf32>
      %32 = arith.addf %31, %30 : vector<8x128xf32>
      %33 = arith.divf %31, %32 : vector<8x128xf32>
      %cst_14 = arith.constant 0.000000e+00 : f32
      %34 = vector.shape_cast %17 : vector<8x1xi1> to vector<8x1xi1>
      %35 = vector.broadcast %34 : vector<8x1xi1> to vector<8x128xi1>
      %36 = vector.broadcast %cst_14 : f32 to vector<8x128xf32>
      %37 = arith.select %35, %33, %36 : vector<8x128xi1>, vector<8x128xf32>
      %c0_15 = arith.constant 0 : index
      %c0_16 = arith.constant 0 : index
      %c0_17 = arith.constant 0 : index
      %38 = vector.load %arg4[%c0_15, %c0_16, %c0_17] : memref<1x1x128xf32, #tpu.memory_space<vmem>>, vector<1x1x128xf32>
      %39 = vector.shape_cast %38 : vector<1x1x128xf32> to vector<1x128xf32>
      %cst_18 = arith.constant dense<0.000000e+00> : vector<128xf32>
      %40 = vector.multi_reduction <add>, %37, %cst_18 [0] : vector<8x128xf32> to vector<128xf32>
      %41 = vector.shape_cast %40 : vector<128xf32> to vector<1x128xf32>
      %42 = arith.addf %39, %41 : vector<1x128xf32>
      %c0_19 = arith.constant 0 : index
      %c0_20 = arith.constant 0 : index
      %c0_21 = arith.constant 0 : index
      %43 = vector.load %arg4[%c0_19, %c0_20, %c0_21] : memref<1x1x128xf32, #tpu.memory_space<vmem>>, vector<1x1x128xf32>
      %44 = vector.shape_cast %43 : vector<1x1x128xf32> to vector<1x128xf32>
      %45 = vector.shape_cast %42 : vector<1x128xf32> to vector<1x1x128xf32>
      tpu.vector_store %arg4[%c0_19, %c0_20, %c0_21], %45 {strides = array<i32>} : memref<1x1x128xf32, #tpu.memory_space<vmem>>, vector<1x1x128xf32>,
      %c0_22 = arith.constant 0 : index
      %c0_23 = arith.constant 0 : index
      %c0_24 = arith.constant 0 : index
      %46 = vector.load %arg5[%c0_22, %c0_23, %c0_24] : memref<1x1x128xf32, #tpu.memory_space<vmem>>, vector<1x1x128xf32>
      %47 = vector.shape_cast %46 : vector<1x1x128xf32> to vector<1x128xf32>
      %48 = math.absf %21 : vector<8x128xf32>
      %cst_25 = arith.constant 0.00999999977 : f32
      %49 = vector.broadcast %cst_25 : f32 to vector<8x128xf32>
      %50 = arith.cmpf ogt, %48, %49 : vector<8x128xf32>
      %51 = arith.extui %50 : vector<8x128xi1> to vector<8x128xi32>
      %52 = arith.sitofp %51 : vector<8x128xi32> to vector<8x128xf32>
      %cst_26 = arith.constant dense<0.000000e+00> : vector<128xf32>
      %53 = vector.multi_reduction <add>, %52, %cst_26 [0] : vector<8x128xf32> to vector<128xf32>
      %54 = vector.shape_cast %53 : vector<128xf32> to vector<1x128xf32>
      %55 = arith.addf %47, %54 : vector<1x128xf32>
      %c0_27 = arith.constant 0 : index
      %c0_28 = arith.constant 0 : index
      %c0_29 = arith.constant 0 : index
      %56 = vector.load %arg5[%c0_27, %c0_28, %c0_29] : memref<1x1x128xf32, #tpu.memory_space<vmem>>, vector<1x1x128xf32>
      %57 = vector.shape_cast %56 : vector<1x1x128xf32> to vector<1x128xf32>
      %58 = vector.shape_cast %55 : vector<1x128xf32> to vector<1x1x128xf32>
      tpu.vector_store %arg5[%c0_27, %c0_28, %c0_29], %58 {strides = array<i32>} : memref<1x1x128xf32, #tpu.memory_space<vmem>>, vector<1x1x128xf32>,
    } else {
    }
    return
  }
  func.func @transform_0(%arg0: i32, %arg1: i32) -> (i32, i32) {
    %c1_i32 = arith.constant 1 : i32
    %0 = arith.muli %arg0, %c1_i32 : i32
    %1 = arith.addi %0, %arg1 : i32
    %c0_i32 = arith.constant 0 : i32
    %c0_i32_0 = arith.constant 0 : i32
    return %1, %c0_i32 : i32, i32
  }
  func.func @transform_1(%arg0: i32, %arg1: i32) -> (i32, i32, i32) {
    %c0_i32 = arith.constant 0 : i32
    %c0_i32_0 = arith.constant 0 : i32
    %c0_i32_1 = arith.constant 0 : i32
    return %arg0, %c0_i32, %c0_i32_0 : i32, i32, i32
  }
  func.func @transform_2(%arg0: i32, %arg1: i32) -> (i32, i32, i32) {
    %c0_i32 = arith.constant 0 : i32
    %c0_i32_0 = arith.constant 0 : i32
    %c0_i32_1 = arith.constant 0 : i32
    return %arg0, %c0_i32, %c0_i32_0 : i32, i32, i32
  }
  func.func @transform_3(%arg0: i32, %arg1: i32) -> (i32, i32, i32) {
    %c0_i32 = arith.constant 0 : i32
    %c0_i32_0 = arith.constant 0 : i32
    %c0_i32_1 = arith.constant 0 : i32
    return %arg0, %c0_i32, %c0_i32_0 : i32, i32, i32
  }
}

</mosaic_0001>

<bundles_post_ra>
// kernel: tpu_custom_call.1
= control target key start
LH: loop header
LB: loop body
LE: loop exit
PB: predicated region body
PF: predicated region fallthrough
CT: control target
= control target key end

     0   :  { %9 = vsyncpa [#allocation3], 0  ;;  %s974_s0 = inlined_call_operand.hbm [shape: f32[4,128], index: 0, kind: input, shape index: {}]   ;;  %s975_s1 = inlined_call_operand.hbm [shape: f32[1,128,128], index: 1, kind: output, shape index: {0}]   ;;  %s976_s2 = inlined_call_operand.hbm [shape: f32[1,1,128], index: 2, kind: output, shape index: {1}]   ;;  %s977_s3 = inlined_call_operand.hbm [shape: f32[1,1,128], index: 3, kind: output, shape index: {2}]  }
   0x1   :  { %10 = vsyncpa [#allocation4], 0 }
   0x2   :  { %11 = vsyncpa [#allocation7], 0 }
   0x3   :  { %20 = vsyncadd [#allocation3], 64  ;;  %s911_s12 = smov [#allocation2]  }
   0x4   :  { %s25_s13 = sshll.u32 %s911_s12, 4  ;;  %s26_s13 = int_to_ptr.vmem [resolvable:$true] %s25_s13 }
   0x5   :  { %s833_s14 = scalar_lea.vmem %s26_s13, 64  ;;  %s837_s15 = scalar_lea.vmem %s26_s13, 128 }
   0x6   :  { %p834_p0 = scmp.ne.s32.totalorder %s26_s13, %s833_s14  ;;  %p838_p1 = scmp.lt.s32.totalorder %s26_s13, %s26_s13 }
   0x7   :  { %p839_p2 = scmp.lt.s32.totalorder %s837_s15, %s833_s14 }
   0x9   :  { %p840_p3 = por %p839_p2, %p838_p1 }
   0xb   :  { %p841_p4 = pnand %p840_p3, %p834_p0 }
   0xd   :  { %844 = shalt.err (!%p841_p4)
}
   0xe   :  { %s912_s16 = smov 64   ;;  %s913_s17 = smov 4  }
   0xf   :  { %31 = dma.hbm_to_vmem [thread:$0]  %s974_s0, 64, %s26_s13, [#allocation3], %s912_s16, %s912_s16, %s913_s17  }
  0x10   :  { %905 = dma.done.wait [#allocation3], 128  }
  0x11   :  { %906 = vsyncadd [#allocation3], 4294967168  ;;  %v375_v0 = vlaneseq  ;;  %v914_v1 = vmov 0.0   ;;  %v373_v3 = vld [vmem:[#allocation2] sm:$0xff]  ;;  %vm431_vm1 = vcmask 64512   ;;  %s915_s0 = smov [#allocation6]  }
  0x12   :  { %60 = vst [vmem:[#allocation6] sm:$0x1] %v914_v1  ;;  %61 = vst [vmem:[#allocation8] sm:$0x1] %v914_v1  ;;  %s704_s20 = sshll.u32 %s915_s0, 4  ;;  %s705_s20 = int_to_ptr.vmem [resolvable:$true] %s704_s20 }
  0x13   :  { %v376_v2 = vshrl.u32 %v375_v0, 7  ;;  %s845_s21 = scalar_lea.vmem %s705_s20, 16  ;;  %s849_s22 = scalar_lea.vmem %s705_s20, 32 }
  0x14   :  { %p846_p5 = scmp.ne.s32.totalorder %s705_s20, %s845_s21  ;;  %p850_p6 = scmp.lt.s32.totalorder %s705_s20, %s705_s20 }
  0x15   :  { %vm379_vm0 = vcmp.lt.s32.totalorder %v376_v2, 4  ;;  %p851_p7 = scmp.lt.s32.totalorder %s849_s22, %s845_s21 }
  0x16   :  { %v382_v4 = vsel %vm379_vm0, %v373_v3, 0.0  ;;  %784 = vmatprep.subr.msk.mxu0 %vm379_vm0, %v373_v3  ;;  %810 = vmatprep.subr.msk.mxu1 %vm379_vm0, %v373_v3 }
  0x17   :  { %399 = vxpose.xlu0.b32.start.end [1/1] (short) %v382_v4, 128  ;;  %785 = vmatpush3.msk.msra.mxu0 %vm379_vm0, %v373_v3  ;;  %v765_v21 = vmul.f32 -1.442695, %v382_v4  ;;  %v674_v24 = vand.u32 2147483647, %v382_v4  ;;  %p852_p8 = por %p851_p7, %p850_p6 }
  0x18   :  { %811 = vmatpush3.msk.msra.mxu1 %vm379_vm0, %v373_v3 }
  0x19   :  { %821 = vpow2.f32 %v765_v21  ;;  %vm675_vm2 = vcmp.gt.f32.partialorder %v674_v24, 0.01  ;;  %v664_v39 = vld [vmem:[#allocation6] sm:$0x1]  ;;  %v673_v42 = vld [vmem:[#allocation8] sm:$0x1]  ;;  %p853_p9 = pnand %p852_p8, %p846_p5 }
  0x1a   :  { %v766_v25 = vsel %vm675_vm2, 1.0, %v914_v1 }
  0x1b   :  { %v678_v26 = vrot.slane %v766_v25, 4 }
  0x1d   :  { %v679_v27 = vadd.f32 %v766_v25, %v678_v26 }
  0x1f   :  { %v680_v29 = vrot.slane %v679_v27, 2 }
  0x21   :  { %v681_v33 = vadd.f32 %v680_v29, %v679_v27 }
  0x23   :  { %v682_v36 = vrot.slane %v681_v33, 1 }
  0x25   :  { %v683_v40 = vadd.f32 %v682_v36, %v681_v33 }
  0x26   :  { %v822_v22 = vpop.eup %821 }
  0x27   :  { %v660_v23 = vadd.f32 1.0, %v822_v22  ;;  %v684_v43 = vadd.f32 %v683_v40, %v673_v42 }
  0x29   :  { %823 = vrcp.f32 %v660_v23 }
  0x36   :  { %v824_v28 = vpop.eup %823 }
  0x37   :  { %v663_v30 = vsel %vm379_vm0, %v824_v28, 0.0 }
  0x38   :  { %v665_v31 = vrot.slane %v663_v30, 4 }
  0x3a   :  { %v666_v32 = vadd.f32 %v665_v31, %v663_v30 }
  0x3c   :  { %v667_v34 = vrot.slane %v666_v32, 2 }
  0x3e   :  { %v668_v35 = vadd.f32 %v667_v34, %v666_v32 }
  0x40   :  { %v669_v37 = vrot.slane %v668_v35, 1 }
  0x42   :  { %v670_v38 = vadd.f32 %v669_v37, %v668_v35 }
  0x44   :  { %v671_v41 = vadd.f32 %v670_v38, %v664_v39 }
  0x46   :  { %672 = vst [vmem:[#allocation6] sm:$0x1] %v671_v41 }
  0x93   :  { %v415_v5 = vpop.trf.xlu0 }
  0x94   :  { %786 = vmatprep.mubr.msk.f32.mxu0 %vm431_vm1, %v415_v5 }
  0x97   :  { %v416_v6 = vpop.trf.xlu0 }
  0x98   :  { %787 = vmatmul.mubr.msk.f32.vlgmr.msra.gmra.mxu0 %vm431_vm1, %v416_v6 }
  0x9b   :  { %v417_v7 = vpop.trf.xlu0 }
  0x9c   :  { %789 = vmatprep.mubr.msk.f32.mxu0 %vm431_vm1, %v417_v7 }
  0x9f   :  { %v418_v8 = vpop.trf.xlu0 }
  0xa0   :  { %790 = vmatmul.mubr.msk.f32.gmra.mxu0 %vm431_vm1, %v418_v8 }
  0xa3   :  { %v419_v9 = vpop.trf.xlu0 }
  0xa4   :  { %792 = vmatprep.mubr.msk.f32.mxu0 %vm431_vm1, %v419_v9 }
  0xa7   :  { %v420_v10 = vpop.trf.xlu0 }
  0xa8   :  { %793 = vmatmul.mubr.msk.f32.gmra.mxu0 %vm431_vm1, %v420_v10 }
  0xab   :  { %v421_v11 = vpop.trf.xlu0 }
  0xac   :  { %795 = vmatprep.mubr.msk.f32.mxu0 %vm431_vm1, %v421_v11 }
  0xaf   :  { %v422_v12 = vpop.trf.xlu0 }
  0xb0   :  { %796 = vmatmul.mubr.msk.f32.gmra.mxu0 %vm431_vm1, %v422_v12 }
  0xb3   :  { %v423_v13 = vpop.trf.xlu0 }
  0xb4   :  { %798 = vmatprep.mubr.msk.f32.mxu1 %vm431_vm1, %v423_v13 }
  0xb7   :  { %v424_v14 = vpop.trf.xlu0 }
  0xb8   :  { %799 = vmatmul.mubr.msk.f32.vlgmr.msra.gmra.mxu1 %vm431_vm1, %v424_v14 }
  0xbb   :  { %v425_v15 = vpop.trf.xlu0 }
  0xbc   :  { %801 = vmatprep.mubr.msk.f32.mxu1 %vm431_vm1, %v425_v15 }
  0xbf   :  { %v426_v16 = vpop.trf.xlu0 }
  0xc0   :  { %802 = vmatmul.mubr.msk.f32.gmra.mxu1 %vm431_vm1, %v426_v16 }
  0xc3   :  { %v427_v17 = vpop.trf.xlu0 }
  0xc4   :  { %804 = vmatprep.mubr.msk.f32.mxu1 %vm431_vm1, %v427_v17 }
  0xc7   :  { %v428_v18 = vpop.trf.xlu0 }
  0xc8   :  { %805 = vmatmul.mubr.msk.f32.gmra.mxu1 %vm431_vm1, %v428_v18 }
  0xcb   :  { %v429_v19 = vpop.trf.xlu0 }
  0xcc   :  { %807 = vmatprep.mubr.msk.f32.mxu1 %vm431_vm1, %v429_v19 }
  0xcf   :  { %v430_v20 = vpop.trf.xlu0 }
  0xd0   :  { %808 = vmatmul.mubr.msk.f32.gmra.mxu1 %vm431_vm1, %v430_v20 }
  0xd1   :  { %856 = shalt.err (!%p853_p9)
}
  0xd2   :  { %707 = dma.vmem_to_hbm [thread:$0]  %s705_s20, 16, %s976_s2, [#allocation7]   ;;  %685 = vst [vmem:[#allocation8] sm:$0x1] %v684_v43 }
  0xd3   :  { %s916_s25 = smov [#allocation8]  }
  0xd4   :  { %s714_s26 = sshll.u32 %s916_s25, 4  ;;  %s715_s26 = int_to_ptr.vmem [resolvable:$true] %s714_s26 }
  0xd5   :  { %s865_s27 = scalar_lea.vmem %s715_s26, 16  ;;  %s869_s28 = scalar_lea.vmem %s715_s26, 32 }
  0xd6   :  { %p866_p10 = scmp.ne.s32.totalorder %s715_s26, %s865_s27  ;;  %p870_p11 = scmp.lt.s32.totalorder %s715_s26, %s715_s26 }
  0xd7   :  { %p871_p12 = scmp.lt.s32.totalorder %s869_s28, %s865_s27 }
  0xd9   :  { %p872_p13 = por %p871_p12, %p870_p11 }
  0xdb   :  { %p873_p0 = pnand %p872_p13, %p866_p10 }
  0xdd   :  { %876 = shalt.err (!%p873_p0)
}
  0xde   :  { %717 = dma.vmem_to_hbm [thread:$0]  %s715_s26, 16, %s977_s3, [#allocation7]  }
  0xdf   :  { %s917_s2 = smov [#allocation5]  }
  0xe0   :  { %s691_s3 = sshll.u32 %s917_s2, 4  ;;  %s692_s3 = int_to_ptr.vmem [resolvable:$true] %s691_s3 }
  0xe1   :  { %s885_s4 = scalar_lea.vmem %s692_s3, 2048  ;;  %p890_p2 = scmp.lt.s32.totalorder %s692_s3, %s692_s3 }
  0xe2   :  { %p886_p1 = scmp.ne.s32.totalorder %s692_s3, %s885_s4  ;;  %p891_p3 = scmp.lt.s32.totalorder %s885_s4, %s885_s4 }
  0xe4   :  { %p892_p4 = por %p891_p3, %p890_p2 }
  0xe6   :  { %p893_p5 = pnand %p892_p4, %p886_p1 }
 0x158   :  { %v788_v44 = vpop.f32.mrf.mxu0 }
 0x159   :  { %642 = vst [vmem:[#allocation5 + $0x8] sm:$0xff] %v788_v44 }
 0x15a   :  { %v546_v45 = vpop.f32.mrf.mxu0 }
 0x15b   :  { %641 = vst [vmem:[#allocation5] sm:$0xff] %v546_v45 }
 0x160   :  { %v791_v46 = vpop.f32.mrf.mxu0 }
 0x161   :  { %644 = vst [vmem:[#allocation5 + $0x18] sm:$0xff] %v791_v46 }
 0x162   :  { %v556_v47 = vpop.f32.mrf.mxu0 }
 0x163   :  { %643 = vst [vmem:[#allocation5 + $0x10] sm:$0xff] %v556_v47 }
 0x168   :  { %v794_v48 = vpop.f32.mrf.mxu0 }
 0x169   :  { %646 = vst [vmem:[#allocation5 + $0x28] sm:$0xff] %v794_v48 }
 0x16a   :  { %v566_v49 = vpop.f32.mrf.mxu0 }
 0x16b   :  { %645 = vst [vmem:[#allocation5 + $0x20] sm:$0xff] %v566_v49 }
 0x170   :  { %v797_v50 = vpop.f32.mrf.mxu0 }
 0x171   :  { %648 = vst [vmem:[#allocation5 + $0x38] sm:$0xff] %v797_v50 }
 0x172   :  { %v576_v51 = vpop.f32.mrf.mxu0 }
 0x173   :  { %647 = vst [vmem:[#allocation5 + $0x30] sm:$0xff] %v576_v51 }
 0x178   :  { %v800_v52 = vpop.f32.mrf.mxu1 }
 0x179   :  { %650 = vst [vmem:[#allocation5 + $0x48] sm:$0xff] %v800_v52 }
 0x17a   :  { %v586_v53 = vpop.f32.mrf.mxu1 }
 0x17b   :  { %649 = vst [vmem:[#allocation5 + $0x40] sm:$0xff] %v586_v53 }
 0x180   :  { %v803_v54 = vpop.f32.mrf.mxu1 }
 0x181   :  { %652 = vst [vmem:[#allocation5 + $0x58] sm:$0xff] %v803_v54 }
 0x182   :  { %v596_v55 = vpop.f32.mrf.mxu1 }
 0x183   :  { %651 = vst [vmem:[#allocation5 + $0x50] sm:$0xff] %v596_v55 }
 0x188   :  { %v806_v56 = vpop.f32.mrf.mxu1 }
 0x189   :  { %654 = vst [vmem:[#allocation5 + $0x68] sm:$0xff] %v806_v56 }
 0x18a   :  { %v606_v57 = vpop.f32.mrf.mxu1 }
 0x18b   :  { %653 = vst [vmem:[#allocation5 + $0x60] sm:$0xff] %v606_v57 }
 0x190   :  { %v809_v58 = vpop.f32.mrf.mxu1 }
 0x191   :  { %656 = vst [vmem:[#allocation5 + $0x78] sm:$0xff] %v809_v58 }
 0x192   :  { %v616_v59 = vpop.f32.mrf.mxu1 }
 0x193   :  { %655 = vst [vmem:[#allocation5 + $0x70] sm:$0xff] %v616_v59 }
 0x194   :  { %896 = shalt.err (!%p893_p5)
}
 0x195   :  { %s918_s5 = smov 128   ;;  %s919_s6 = smov 8  }
 0x196   :  { %697 = dma.vmem_to_hbm [thread:$0]  %s692_s3, 2048, %s975_s1, [#allocation4], %s918_s5, %s918_s5, %s919_s6  }
 0x197   :  { %907 = dma.done.wait [#allocation4], 2048  }
 0x198   :  { %908 = vsyncadd [#allocation4], 4294965248 }
 0x199   :  { %909 = dma.done.wait [#allocation7], 32  }
 0x19a   :  { %910 = vsyncadd [#allocation7], 4294967264 }
 0x19b   :  { %727 = vsyncpa [#allocation3], 1 }
 0x19c   :  { %728 = vsyncpa [#allocation4], 1 }
 0x19d   :  { %729 = vsyncpa [#allocation7], 1 }

</bundles_post_ra>
